<compile_context>
chip_gen: v7x
topology: tpu7x:2x2x1
jax: 0.10.0
libtpu: 0.0.40
codegen_flags: <defaults>
</compile_context>

<pallas_src>
import functools

import jax
import jax.numpy as jnp
from jax import lax
from jax.experimental import pallas as pl
from jax.experimental.pallas import tpu as pltpu


def _round_up(x, m):
    return ((x + m - 1) // m) * m


# --------------------------------------------------------------------------- #
# kernel
# --------------------------------------------------------------------------- #
def _predictor_kernel(xs_ref, xa_ref,
                      w1s_ref, w1a_ref, b1_ref,
                      w2_ref, b2_ref,
                      w3_ref, b3_ref,
                      out_ref, *, norm_features, compute_dtype):
    dt = compute_dtype

    xs = xs_ref[...].astype(dt)                 # [TB, enc_dim]
    xa = xa_ref[...].astype(dt)                 # [TB, action_dim]

    # ---- layer 1: (Linear with folded BN) + ReLU; split matmul replaces cat --
    h = (jnp.dot(xs, w1s_ref[...], preferred_element_type=jnp.float32)
         + jnp.dot(xa, w1a_ref[...], preferred_element_type=jnp.float32)
         + b1_ref[...])
    h = jnp.maximum(h, 0.0)

    # ---- layer 2: (Linear with folded BN) + ReLU ----------------------------
    h = jnp.dot(h.astype(dt), w2_ref[...],
                preferred_element_type=jnp.float32) + b2_ref[...]
    h = jnp.maximum(h, 0.0)

    # ---- final Linear (output columns = enc_dim, unpadded) ------------------
    y = jnp.dot(h.astype(dt), w3_ref[...],
                preferred_element_type=jnp.float32) + b3_ref[...]

    if norm_features:
        ss = jnp.sum(y * y, axis=-1, keepdims=True)
        y = y * lax.rsqrt(jnp.maximum(ss, 1e-24))   # == y / max(||y||, 1e-12)

    out_ref[...] = y.astype(out_ref.dtype)


# --------------------------------------------------------------------------- #
# one-time parameter prep: fold BN, pad hidden dims to 128, split W1, cast
# --------------------------------------------------------------------------- #
def prepare_params(params, enc_dim, *, bn_eps=1e-5, compute_dtype=jnp.bfloat16):
    # BN(eval) fold:  y = ((x@W + b) - m) * g*rsqrt(v+eps) + beta
    #              =  x @ (W*s) + ((b - m)*s + beta),  s = g*rsqrt(v+eps)
    s1 = params["g1"] * lax.rsqrt(params["v1"] + bn_eps)
    w1f = params["w1"] * s1
    b1f = (params["b1"] - params["m1"]) * s1 + params["be1"]

    s2 = params["g2"] * lax.rsqrt(params["v2"] + bn_eps)
    w2f = params["w2"] * s2
    b2f = (params["b2"] - params["m2"]) * s2 + params["be2"]

    w3, b3 = params["w3"], params["b3"]

    d_in, h1 = w1f.shape
    h2 = w2f.shape[1]
    h1p = _round_up(h1, 128)
    h2p = _round_up(h2, 128)

    def pad2(a, rows, cols):
        return jnp.pad(a, ((0, rows - a.shape[0]), (0, cols - a.shape[1])))

    w1f = pad2(w1f, d_in, h1p)
    b1f = pad2(b1f, 1, h1p)
    w2f = pad2(w2f, h1p, h2p)       # padded rows multiply ReLU(0)=0 -> harmless
    b2f = pad2(b2f, 1, h2p)
    w3p = pad2(w3, h2p, w3.shape[1])   # pad rows only; keep enc_dim out columns

    wdt = compute_dtype
    w1s = w1f[:enc_dim].astype(wdt)     # rows multiplying `state`
    w1a = w1f[enc_dim:].astype(wdt)     # rows multiplying `action`
    return (w1s, w1a, b1f.astype(jnp.float32),
            w2f.astype(wdt), b2f.astype(jnp.float32),
            w3p.astype(wdt), b3.astype(jnp.float32))


# --------------------------------------------------------------------------- #
# wrapper
# --------------------------------------------------------------------------- #
def predictor_forward(state, action, prepared, *, norm_features=False,
                      out_dtype=None, block_b=8192):
    """state: [B, enc_dim], action: [B, action_dim] -> [B, enc_dim]."""
    w1s, w1a, b1, w2, b2, w3, b3 = prepared
    compute_dtype = w1s.dtype
    out_dtype = state.dtype if out_dtype is None else out_dtype

    B, enc_dim = state.shape
    action_dim = action.shape[1]
    h1p, h2p = w2.shape
    s_isize = state.dtype.itemsize
    a_isize = action.dtype.itemsize
    o_isize = jnp.dtype(out_dtype).itemsize
    weight_bytes = sum(int(a.size) * a.dtype.itemsize
                       for a in (w1s, w1a, b1, w2, b2, w3, b3))

    # ---- batch tile selection ------------------------------------------------
    tb = min(block_b, max(8, _round_up(B, 8)))
    # For large batches keep >= ~6 grid steps (>=3 per TensorCore on v7x) so the
    # parallel axis shards across megacore and the pipeline has overlap, but
    # never drop below 2048 rows (per-step overhead amortization).
    if B > 2 * 2048:
        tb = max(2048, min(tb, _round_up(pl.cdiv(B, 6), 8)))

    def vmem_estimate(t):
        lane = lambda d: _round_up(d, 128)
        tiles = t * (lane(enc_dim) * s_isize + lane(action_dim) * a_isize
                     + lane(enc_dim) * o_isize)          # lane-padded VMEM tiles
        interm = t * (h1p + h2p + lane(enc_dim)) * 4     # f32 hidden activations
        return weight_bytes + 2 * tiles + interm         # 2x: double buffering

    # Keep well inside v7x's 64 MiB physical / v5e's scoped defaults.
    while tb > 1024 and vmem_estimate(tb) > (40 << 20):
        tb = max(1024, _round_up(tb // 2, 8))
    vmem_limit = int(min(max(vmem_estimate(tb) + (8 << 20), 32 << 20), 48 << 20))

    grid = (pl.cdiv(B, tb),)

    def batch_spec(cols):
        return pl.BlockSpec((tb, cols), lambda i: (i, 0))

    def resident_spec(shape):
        return pl.BlockSpec(shape, lambda i: (0, 0))   # VMEM-resident across grid

    cost = pl.CostEstimate(
        flops=2 * B * (enc_dim * h1p + action_dim * h1p + h1p * h2p
                       + h2p * enc_dim),
        transcendentals=B if norm_features else 0,
        bytes_accessed=(B * (enc_dim * s_isize + action_dim * a_isize)
                        + B * enc_dim * o_isize + weight_bytes),
    )

    kernel = functools.partial(_predictor_kernel,
                               norm_features=norm_features,
                               compute_dtype=compute_dtype)

    out = pl.pallas_call(
        kernel,
        out_shape=jax.ShapeDtypeStruct((B, enc_dim), out_dtype),
        grid_spec=pltpu.PrefetchScalarGridSpec(
            num_scalar_prefetch=0,
            grid=grid,
            in_specs=[
                batch_spec(enc_dim),        # state
                batch_spec(action_dim),     # action
                resident_spec(w1s.shape),
                resident_spec(w1a.shape),
                resident_spec(b1.shape),
                resident_spec(w2.shape),
                resident_spec(b2.shape),
                resident_spec(w3.shape),
                resident_spec(b3.shape),
            ],
            out_specs=batch_spec(enc_dim),  # store only enc_dim lanes (no slice)
        ),
        compiler_params=pltpu.CompilerParams(
            dimension_semantics=("parallel",),
            vmem_limit_bytes=vmem_limit),
        cost_estimate=cost,
    )(state, action, w1s, w1a, b1, w2, b2, w3, b3)

    return out


# --------------------------------------------------------------------------- #
# deterministic parameter init (matches build_mlp([enc+act] + arch + [enc]))
# --------------------------------------------------------------------------- #
def init_params(key, enc_dim, action_dim, arch):
    dims = [enc_dim + action_dim] + list(map(int, arch.split("-"))) + [enc_dim]
    assert len(dims) == 4, "this fused kernel is written for a 2-hidden-layer arch"
    ks = jax.random.split(key, 16)
    p = {}

    def lin(kw, kb, d_in, d_out):
        # PyTorch Linear stores W as [out, in]; we pre-transpose to [in, out].
        w = jax.random.normal(kw, (d_in, d_out), jnp.float32) * 0.05
        b = jax.random.normal(kb, (1, d_out), jnp.float32) * 0.05
        return w, b

    p["w1"], p["b1"] = lin(ks[0], ks[1], dims[0], dims[1])
    p["w2"], p["b2"] = lin(ks[2], ks[3], dims[1], dims[2])
    p["w3"], p["b3"] = lin(ks[4], ks[5], dims[2], dims[3])

    def bn(kg, kb, km, kv, d):
        g = 1.0 + 0.1 * jax.random.normal(kg, (1, d), jnp.float32)
        be = 0.1 * jax.random.normal(kb, (1, d), jnp.float32)
        m = 0.1 * jax.random.normal(km, (1, d), jnp.float32)
        v = 1.0 + 0.1 * jax.nn.softplus(jax.random.normal(kv, (1, d), jnp.float32))
        return g, be, m, v

    p["g1"], p["be1"], p["m1"], p["v1"] = bn(ks[6], ks[7], ks[8], ks[9], dims[1])
    p["g2"], p["be2"], p["m2"], p["v2"] = bn(ks[10], ks[11], ks[12], ks[13], dims[2])
    return p


def predictor_reference(state, action, params, *, norm_features=False, bn_eps=1e-5):
    """Pure-JAX reference of the original module's forward pass (eval-mode BN)."""
    x = jnp.concatenate([state, action], axis=1).astype(jnp.float32)
    h = x @ params["w1"] + params["b1"]
    h = (h - params["m1"]) * lax.rsqrt(params["v1"] + bn_eps) * params["g1"] + params["be1"]
    h = jnp.maximum(h, 0.0)
    h = h @ params["w2"] + params["b2"]
    h = (h - params["m2"]) * lax.rsqrt(params["v2"] + bn_eps) * params["g2"] + params["be2"]
    h = jnp.maximum(h, 0.0)
    y = h @ params["w3"] + params["b3"]
    if norm_features:
        y = y / jnp.maximum(jnp.sqrt(jnp.sum(y * y, axis=-1, keepdims=True)), 1e-12)
    return y


if __name__ == "__main__":
    # Small shapes consistent with the module: enc_dim=32, action_dim=2, arch="64-64".
    B, ENC_DIM, ACTION_DIM, ARCH = 8, 32, 2, "64-64"

    key = jax.random.PRNGKey(0)
    k_state, k_action, k_params = jax.random.split(key, 3)

    state = jax.random.normal(k_state, (B, ENC_DIM), jnp.float32)
    action = jax.random.normal(k_action, (B, ACTION_DIM), jnp.float32)
    params = init_params(k_params, ENC_DIM, ACTION_DIM, ARCH)

    # Fold BN + pad + cast once (not per forward call).
    prep_f32 = prepare_params(params, ENC_DIM, compute_dtype=jnp.float32)
    prep_bf16 = prepare_params(params, ENC_DIM, compute_dtype=jnp.bfloat16)

    state_bf16 = state.astype(jnp.bfloat16)
    action_bf16 = action.astype(jnp.bfloat16)

    for nf in (False, True):
        ref = predictor_reference(state, action, params, norm_features=nf)

        # exact path (f32 inputs, f32 MXU, f32 output): tight check
        out_f32 = jax.block_until_ready(
            predictor_forward(state, action, prep_f32, norm_features=nf,
                              out_dtype=jnp.float32))
        assert out_f32.shape == (B, ENC_DIM)
        assert jnp.allclose(out_f32, ref, atol=1e-4, rtol=1e-4), \
            f"f32 kernel mismatch vs reference (norm_features={nf})"

        # performance path (bf16 inputs + bf16 MXU, f32 accumulation, f32 out)
        out_bf = jax.block_until_ready(
            predictor_forward(state_bf16, action_bf16, prep_bf16,
                              norm_features=nf, out_dtype=jnp.float32))
        assert out_bf.shape == (B, ENC_DIM)
        assert jnp.allclose(out_bf, ref, atol=3e-2, rtol=3e-2), \
            f"bf16 kernel mismatch vs reference (norm_features={nf})"

        # lowest-byte path (bf16 everything, incl. the output write)
        out_bf16o = jax.block_until_ready(
            predictor_forward(state_bf16, action_bf16, prep_bf16,
                              norm_features=nf, out_dtype=jnp.bfloat16))
        assert out_bf16o.shape == (B, ENC_DIM)
        assert out_bf16o.dtype == jnp.bfloat16
        assert jnp.allclose(out_bf16o.astype(jnp.float32), ref,
                            atol=5e-2, rtol=5e-2), \
            f"bf16-output kernel mismatch vs reference (norm_features={nf})"

    print("KERNEL_OK")
</pallas_src>

<mosaic_0001>
module attributes {stable_mosaic.version = 11 : i64} {
  func.func @_predictor_kernel(%arg0: i32, %arg1: memref<8x32xf32, #tpu.memory_space<vmem>>, %arg2: memref<8x2xf32, #tpu.memory_space<vmem>>, %arg3: memref<32x128xf32, #tpu.memory_space<vmem>>, %arg4: memref<2x128xf32, #tpu.memory_space<vmem>>, %arg5: memref<1x128xf32, #tpu.memory_space<vmem>>, %arg6: memref<128x128xf32, #tpu.memory_space<vmem>>, %arg7: memref<1x128xf32, #tpu.memory_space<vmem>>, %arg8: memref<128x32xf32, #tpu.memory_space<vmem>>, %arg9: memref<1x32xf32, #tpu.memory_space<vmem>>, %arg10: memref<8x32xf32, #tpu.memory_space<vmem>>) attributes {dimension_semantics = [#tpu.dimension_semantics<parallel>], iteration_bounds = array<i64: 1>, scalar_prefetch = 0 : i64, scratch_operands = 0 : i64, tpu.core_type = #tpu.core_type<tc>, window_params = [{transform_indices = @transform_0, window_bounds = array<i64: 8, 32>}, {transform_indices = @transform_1, window_bounds = array<i64: 8, 2>}, {pipeline_mode = #tpu.pipeline_mode<synchronous>, transform_indices = @transform_2, window_bounds = array<i64: 32, 128>}, {pipeline_mode = #tpu.pipeline_mode<synchronous>, transform_indices = @transform_3, window_bounds = array<i64: 2, 128>}, {pipeline_mode = #tpu.pipeline_mode<synchronous>, transform_indices = @transform_4, window_bounds = array<i64: 1, 128>}, {pipeline_mode = #tpu.pipeline_mode<synchronous>, transform_indices = @transform_5, window_bounds = array<i64: 128, 128>}, {pipeline_mode = #tpu.pipeline_mode<synchronous>, transform_indices = @transform_6, window_bounds = array<i64: 1, 128>}, {pipeline_mode = #tpu.pipeline_mode<synchronous>, transform_indices = @transform_7, window_bounds = array<i64: 128, 32>}, {pipeline_mode = #tpu.pipeline_mode<synchronous>, transform_indices = @transform_8, window_bounds = array<i64: 1, 32>}, {transform_indices = @transform_9, window_bounds = array<i64: 8, 32>}]} {
    %c0 = arith.constant 0 : index
    %c0_0 = arith.constant 0 : index
    %0 = vector.load %arg1[%c0, %c0_0] : memref<8x32xf32, #tpu.memory_space<vmem>>, vector<8x32xf32>
    %c0_1 = arith.constant 0 : index
    %c0_2 = arith.constant 0 : index
    %1 = vector.load %arg2[%c0_1, %c0_2] : memref<8x2xf32, #tpu.memory_space<vmem>>, vector<8x2xf32>
    %c0_3 = arith.constant 0 : index
    %c0_4 = arith.constant 0 : index
    %2 = vector.load %arg3[%c0_3, %c0_4] : memref<32x128xf32, #tpu.memory_space<vmem>>, vector<32x128xf32>
    %cst = arith.constant dense<0.000000e+00> : vector<8x128xf32>
    %3 = tpu.matmul %0, %2, %cst {dimension_numbers = #tpu.dot_dimension_numbers<[1], [0], [0], [1], [0, 0, 1, 1], [], []>} : vector<8x32xf32>, vector<32x128xf32>, vector<8x128xf32> -> vector<8x128xf32>
    %c0_5 = arith.constant 0 : index
    %c0_6 = arith.constant 0 : index
    %4 = vector.load %arg4[%c0_5, %c0_6] : memref<2x128xf32, #tpu.memory_space<vmem>>, vector<2x128xf32>
    %cst_7 = arith.constant dense<0.000000e+00> : vector<8x128xf32>
    %5 = tpu.matmul %1, %4, %cst_7 {dimension_numbers = #tpu.dot_dimension_numbers<[1], [0], [0], [1], [0, 0, 1, 1], [], []>} : vector<8x2xf32>, vector<2x128xf32>, vector<8x128xf32> -> vector<8x128xf32>
    %6 = arith.addf %3, %5 : vector<8x128xf32>
    %c0_8 = arith.constant 0 : index
    %c0_9 = arith.constant 0 : index
    %7 = vector.load %arg5[%c0_8, %c0_9] : memref<1x128xf32, #tpu.memory_space<vmem>>, vector<1x128xf32>
    %8 = vector.broadcast %7 : vector<1x128xf32> to vector<8x128xf32>
    %9 = arith.addf %6, %8 : vector<8x128xf32>
    %cst_10 = arith.constant 0.000000e+00 : f32
    %10 = vector.broadcast %cst_10 : f32 to vector<8x128xf32>
    %11 = arith.maximumf %9, %10 : vector<8x128xf32>
    %c0_11 = arith.constant 0 : index
    %c0_12 = arith.constant 0 : index
    %12 = vector.load %arg6[%c0_11, %c0_12] : memref<128x128xf32, #tpu.memory_space<vmem>>, vector<128x128xf32>
    %cst_13 = arith.constant dense<0.000000e+00> : vector<8x128xf32>
    %13 = tpu.matmul %11, %12, %cst_13 {dimension_numbers = #tpu.dot_dimension_numbers<[1], [0], [0], [1], [0, 0, 1, 1], [], []>} : vector<8x128xf32>, vector<128x128xf32>, vector<8x128xf32> -> vector<8x128xf32>
    %c0_14 = arith.constant 0 : index
    %c0_15 = arith.constant 0 : index
    %14 = vector.load %arg7[%c0_14, %c0_15] : memref<1x128xf32, #tpu.memory_space<vmem>>, vector<1x128xf32>
    %15 = vector.broadcast %14 : vector<1x128xf32> to vector<8x128xf32>
    %16 = arith.addf %13, %15 : vector<8x128xf32>
    %cst_16 = arith.constant 0.000000e+00 : f32
    %17 = vector.broadcast %cst_16 : f32 to vector<8x128xf32>
    %18 = arith.maximumf %16, %17 : vector<8x128xf32>
    %c0_17 = arith.constant 0 : index
    %c0_18 = arith.constant 0 : index
    %19 = vector.load %arg8[%c0_17, %c0_18] : memref<128x32xf32, #tpu.memory_space<vmem>>, vector<128x32xf32>
    %cst_19 = arith.constant dense<0.000000e+00> : vector<8x32xf32>
    %20 = tpu.matmul %18, %19, %cst_19 {dimension_numbers = #tpu.dot_dimension_numbers<[1], [0], [0], [1], [0, 0, 1, 1], [], []>} : vector<8x128xf32>, vector<128x32xf32>, vector<8x32xf32> -> vector<8x32xf32>
    %c0_20 = arith.constant 0 : index
    %c0_21 = arith.constant 0 : index
    %21 = vector.load %arg9[%c0_20, %c0_21] : memref<1x32xf32, #tpu.memory_space<vmem>>, vector<1x32xf32>
    %22 = vector.broadcast %21 : vector<1x32xf32> to vector<8x32xf32>
    %23 = arith.addf %20, %22 : vector<8x32xf32>
    %c0_22 = arith.constant 0 : index
    %c0_23 = arith.constant 0 : index
    %24 = vector.load %arg10[%c0_22, %c0_23] : memref<8x32xf32, #tpu.memory_space<vmem>>, vector<8x32xf32>
    tpu.vector_store %arg10[%c0_22, %c0_23], %23 {strides = array<i32>} : memref<8x32xf32, #tpu.memory_space<vmem>>, vector<8x32xf32>,
    return
  }
  func.func @transform_0(%arg0: i32) -> (i32, i32) {
    %c0_i32 = arith.constant 0 : i32
    %c0_i32_0 = arith.constant 0 : i32
    return %arg0, %c0_i32 : i32, i32
  }
  func.func @transform_1(%arg0: i32) -> (i32, i32) {
    %c0_i32 = arith.constant 0 : i32
    %c0_i32_0 = arith.constant 0 : i32
    return %arg0, %c0_i32 : i32, i32
  }
  func.func @transform_2(%arg0: i32) -> (i32, i32) {
    %c0_i32 = arith.constant 0 : i32
    %c0_i32_0 = arith.constant 0 : i32
    %c0_i32_1 = arith.constant 0 : i32
    return %c0_i32, %c0_i32_0 : i32, i32
  }
  func.func @transform_3(%arg0: i32) -> (i32, i32) {
    %c0_i32 = arith.constant 0 : i32
    %c0_i32_0 = arith.constant 0 : i32
    %c0_i32_1 = arith.constant 0 : i32
    return %c0_i32, %c0_i32_0 : i32, i32
  }
  func.func @transform_4(%arg0: i32) -> (i32, i32) {
    %c0_i32 = arith.constant 0 : i32
    %c0_i32_0 = arith.constant 0 : i32
    %c0_i32_1 = arith.constant 0 : i32
    return %c0_i32, %c0_i32_0 : i32, i32
  }
  func.func @transform_5(%arg0: i32) -> (i32, i32) {
    %c0_i32 = arith.constant 0 : i32
    %c0_i32_0 = arith.constant 0 : i32
    %c0_i32_1 = arith.constant 0 : i32
    return %c0_i32, %c0_i32_0 : i32, i32
  }
  func.func @transform_6(%arg0: i32) -> (i32, i32) {
    %c0_i32 = arith.constant 0 : i32
    %c0_i32_0 = arith.constant 0 : i32
    %c0_i32_1 = arith.constant 0 : i32
    return %c0_i32, %c0_i32_0 : i32, i32
  }
  func.func @transform_7(%arg0: i32) -> (i32, i32) {
    %c0_i32 = arith.constant 0 : i32
    %c0_i32_0 = arith.constant 0 : i32
    %c0_i32_1 = arith.constant 0 : i32
    return %c0_i32, %c0_i32_0 : i32, i32
  }
  func.func @transform_8(%arg0: i32) -> (i32, i32) {
    %c0_i32 = arith.constant 0 : i32
    %c0_i32_0 = arith.constant 0 : i32
    %c0_i32_1 = arith.constant 0 : i32
    return %c0_i32, %c0_i32_0 : i32, i32
  }
  func.func @transform_9(%arg0: i32) -> (i32, i32) {
    %c0_i32 = arith.constant 0 : i32
    %c0_i32_0 = arith.constant 0 : i32
    return %arg0, %c0_i32 : i32, i32
  }
}

</mosaic_0001>

<bundles_post_ra>
// kernel: tpu_custom_call.1
= control target key start
LH: loop header
LB: loop body
LE: loop exit
PB: predicated region body
PF: predicated region fallthrough
CT: control target
= control target key end

     0   :  { %14 = vsyncpa [#allocation3], 0  ;;  %s882_s0 = inlined_call_operand.hbm [shape: f32[8,32], index: 0, kind: input, shape index: {}]   ;;  %s883_s1 = inlined_call_operand.vmem [shape: f32[8,2], index: 1, kind: input, shape index: {}]   ;;  %s884_s2 = inlined_call_operand.vmem [shape: f32[32,128], index: 2, kind: input, shape index: {}]   ;;  %s885_s3 = inlined_call_operand.vmem [shape: f32[2,128], index: 3, kind: input, shape index: {}]   ;;  %s886_s4 = inlined_call_operand.vmem [shape: f32[1,128], index: 4, kind: input, shape index: {}]   ;;  %s887_s5 = inlined_call_operand.vmem [shape: f32[128,128], index: 5, kind: input, shape index: {}]   ;;  %s888_s6 = inlined_call_operand.vmem [shape: f32[1,128], index: 6, kind: input, shape index: {}]   ;;  %s889_s7 = inlined_call_operand.vmem [shape: f32[128,32], index: 7, kind: input, shape index: {}]   ;;  %s890_s8 = inlined_call_operand.vmem [shape: f32[1,32], index: 8, kind: input, shape index: {}]   ;;  %s891_s9 = inlined_call_operand.hbm [shape: f32[8,32], index: 9, kind: output, shape index: {}]  }
   0x1   :  { %15 = vsyncpa [#allocation4], 0  ;;  %s656_s30 = smov [#allocation2]   ;;  %s608_s13 = scalar_lea.hbm %s882_s0, 128 }
   0x2   :  { %s22_s10 = sshll.u32 %s656_s30, 4  ;;  %p609_p0 = scmp.ne.s32.totalorder %s882_s0, %s608_s13  ;;  %s23_s10 = int_to_ptr.vmem [resolvable:$true] %s22_s10 }
   0x3   :  { %p612_p1 = scmp.lt.u32.totalorder %s608_s13, %s882_s0 }
   0x5   :  { %p614_p2 = pnand %p612_p1, %p609_p0 }
   0x7   :  { %617 = shalt.err (!%p614_p2)
}
   0x8   :  { %s618_s18 = scalar_lea.vmem %s23_s10, 128  ;;  %p623_p4 = scmp.lt.s32.totalorder %s23_s10, %s23_s10 }
   0x9   :  { %p619_p3 = scmp.ne.s32.totalorder %s23_s10, %s618_s18  ;;  %p624_p5 = scmp.lt.s32.totalorder %s618_s18, %s618_s18 }
   0xb   :  { %p625_p6 = por %p624_p5, %p623_p4 }
   0xd   :  { %p626_p7 = pnand %p625_p6, %p619_p3 }
   0xf   :  { %629 = shalt.err (!%p626_p7)
}
  0x10   :  { %25 = dma.hbm_to_vmem [thread:$0]  %s882_s0, 128, %s23_s10, [#allocation3]  }
  0x11   :  { %652 = dma.done.wait [#allocation3], 128  }
  0x12   :  { %653 = vsyncadd [#allocation3], 4294967168  ;;  %v657_v0 = vmov 0.0|0.0   ;;  %v658_v1 = vmov 0.0   ;;  %vm659_vm0 = vmmov 0   ;;  %vm56_vm1 = vcmask 1041408  }
  0x13   :  { %549 = vmatprep.subr.bf16.mxu1 %v657_v0  ;;  %463 = vmatprep.subr.mxu0 %v658_v1  ;;  %v47_v2 = vld [vmem:[%s884_s2] sm:$0xff]  ;;  %v48_v3 = vld [vmem:[%s884_s2 + $0x8] sm:$0xff]  ;;  %v49_v4 = vld [vmem:[%s884_s2 + $0x10] sm:$0xff]  ;;  %vm52_vm2 = vcmask 15360   ;;  %vm130_vm3 = vcmask 261120   ;;  %s660_s0 = smov [#allocation5]  }
  0x14   :  { %465 = vmatprep.mubr.msk.f32.mxu0 %vm659_vm0, %v658_v1  ;;  %476 = vmatprep.mubr.msk.f32.mxu1 %vm659_vm0, %v658_v1  ;;  %v550_v5 = vpack.c.bf16 %v48_v3, %v47_v2  ;;  %v50_v6 = vld [vmem:[%s884_s2 + $0x18] sm:$0xff]  ;;  %v51_v7 = vld [vmem:[%s885_s3] sm:$0x3]  ;;  %v214_v10 = vld [vmem:[%s887_s5 + $0x8] sm:$0xff]  ;;  %s407_s25 = sshll.u32 %s660_s0, 4  ;;  %s408_s25 = int_to_ptr.vmem [resolvable:$true] %s407_s25 }
  0x15   :  { %v46_v8 = vld [vmem:[%s883_s1] sm:$0xff]  ;;  %464 = vmatpush3.msk.msra.mxu0 %vm56_vm1, %v51_v7  ;;  %v553_v11 = vpack.c.bf16 %v50_v6, %v49_v4  ;;  %v215_v13 = vld [vmem:[%s887_s5 + $0x10] sm:$0xff]  ;;  %v216_v14 = vld [vmem:[%s887_s5 + $0x18] sm:$0xff]  ;;  %p635_p9 = scmp.lt.s32.totalorder %s408_s25, %s408_s25 }
  0x16   :  { %v213_v9 = vld [vmem:[%s887_s5] sm:$0xff]  ;;  %551 = vmatpush3.bf16.msra.mxu1 %v550_v5  ;;  %466 = vmatmul.mubr.msk.f32.vlgmr.msra.gmra.mrb[0].mxu0 %vm52_vm2, %v46_v8  ;;  %v559_v15 = vpack.c.bf16 %v216_v14, %v215_v13  ;;  %v218_v17 = vld [vmem:[%s887_s5 + $0x28] sm:$0xff]  ;;  %v219_v20 = vld [vmem:[%s887_s5 + $0x30] sm:$0xff] }
  0x17   :  { %v556_v12 = vpack.c.bf16 %v214_v10, %v213_v9  ;;  %552 = vmatprep.subr.bf16.mxu1 %v657_v0  ;;  %555 = vmatprep.subr.bf16.mxu0 %v657_v0  ;;  %v217_v16 = vld [vmem:[%s887_s5 + $0x20] sm:$0xff]  ;;  %v220_v21 = vld [vmem:[%s887_s5 + $0x38] sm:$0xff]  ;;  %v222_v24 = vld [vmem:[%s887_s5 + $0x48] sm:$0xff] }
  0x18   :  { %511 = vmatprep.mubr.msk.f32.mxu0 %vm659_vm0, %v658_v1  ;;  %v45_v18 = vld [vmem:[#allocation2] sm:$0xff]  ;;  %v562_v19 = vpack.c.bf16 %v218_v17, %v217_v16  ;;  %v565_v22 = vpack.c.bf16 %v220_v21, %v219_v20  ;;  %v223_v26 = vld [vmem:[%s887_s5 + $0x50] sm:$0xff]  ;;  %v224_v27 = vld [vmem:[%s887_s5 + $0x58] sm:$0xff] }
  0x19   :  { %557 = vmatpush3.bf16.msra.mxu0 %v556_v12  ;;  %v221_v23 = vld [vmem:[%s887_s5 + $0x40] sm:$0xff]  ;;  %v571_v28 = vpack.c.bf16 %v224_v27, %v223_v26  ;;  %v226_v30 = vld [vmem:[%s887_s5 + $0x68] sm:$0xff]  ;;  %v227_v32 = vld [vmem:[%s887_s5 + $0x70] sm:$0xff] }
  0x1a   :  { %558 = vmatprep.subr.bf16.mxu0 %v657_v0  ;;  %554 = vmatpush3.bf16.msra.mxu1 %v553_v11  ;;  %v568_v25 = vpack.c.bf16 %v222_v24, %v221_v23  ;;  %v225_v29 = vld [vmem:[%s887_s5 + $0x60] sm:$0xff]  ;;  %v228_v33 = vld [vmem:[%s887_s5 + $0x78] sm:$0xff]  ;;  %v308_v36 = vld [vmem:[%s889_s7 + $0x8] sm:$0xff] }
  0x1b   :  { %579 = vmatprep.subr.bf16.mxu1 %v657_v0  ;;  %v574_v31 = vpack.c.bf16 %v226_v30, %v225_v29  ;;  %v577_v34 = vpack.c.bf16 %v228_v33, %v227_v32  ;;  %v307_v35 = vld [vmem:[%s889_s7] sm:$0xff]  ;;  %v309_v37 = vld [vmem:[%s889_s7 + $0x10] sm:$0xff]  ;;  %v310_v39 = vld [vmem:[%s889_s7 + $0x18] sm:$0xff] }
  0x1c   :  { %v580_v38 = vpack.c.bf16 %v308_v36, %v307_v35  ;;  %v583_v40 = vpack.c.bf16 %v310_v39, %v309_v37  ;;  %v311_v41 = vld [vmem:[%s889_s7 + $0x20] sm:$0xff]  ;;  %v312_v42 = vld [vmem:[%s889_s7 + $0x28] sm:$0xff]  ;;  %v313_v44 = vld [vmem:[%s889_s7 + $0x30] sm:$0xff] }
  0x1d   :  { %560 = vmatpush3.bf16.msra.mxu0 %v559_v15  ;;  %477 = vmatmul.mubr.msk.f32.vlgmr.msra.gmra.mrb[0].mxu1 %vm130_vm3, %v45_v18  ;;  %v586_v43 = vpack.c.bf16 %v312_v42, %v311_v41  ;;  %v314_v45 = vld [vmem:[%s889_s7 + $0x38] sm:$0xff]  ;;  %v315_v47 = vld [vmem:[%s889_s7 + $0x40] sm:$0xff]  ;;  %v316_v48 = vld [vmem:[%s889_s7 + $0x48] sm:$0xff] }
  0x1e   :  { %561 = vmatprep.subr.bf16.mxu0 %v657_v0  ;;  %546 = vmatprep.mubr.msk.f32.mxu1 %vm659_vm0, %v658_v1  ;;  %v589_v46 = vpack.c.bf16 %v314_v45, %v313_v44  ;;  %v592_v49 = vpack.c.bf16 %v316_v48, %v315_v47  ;;  %v317_v50 = vld [vmem:[%s889_s7 + $0x50] sm:$0xff]  ;;  %v318_v51 = vld [vmem:[%s889_s7 + $0x58] sm:$0xff]  ;;  %v319_v53 = vld [vmem:[%s889_s7 + $0x60] sm:$0xff] }
  0x1f   :  { %581 = vmatpush3.bf16.msra.mxu1 %v580_v38  ;;  %v595_v52 = vpack.c.bf16 %v318_v51, %v317_v50  ;;  %v320_v54 = vld [vmem:[%s889_s7 + $0x68] sm:$0xff]  ;;  %v419_v59 = vld [vmem:[%s886_s4] ss:$0 sm:$0xff]  ;;  %v321_v1 = vld [vmem:[%s889_s7 + $0x70] sm:$0xff] }
  0x20   :  { %582 = vmatprep.subr.bf16.mxu1 %v657_v0  ;;  %v598_v55 = vpack.c.bf16 %v320_v54, %v319_v53  ;;  %v420_v3 = vld [vmem:[%s888_s6] ss:$0 sm:$0xff] }
  0x21   :  { %563 = vmatpush3.bf16.msra.mxu0 %v562_v19  ;;  %v421_v8 = vld [vmem:[%s890_s8] ss:$0 sm:$0xff] }
  0x22   :  { %564 = vmatprep.subr.bf16.mxu0 %v657_v0 }
  0x23   :  { %584 = vmatpush3.bf16.msra.mxu1 %v583_v40 }
  0x24   :  { %585 = vmatprep.subr.bf16.mxu1 %v657_v0 }
  0x25   :  { %566 = vmatpush3.bf16.msra.mxu0 %v565_v22 }
  0x26   :  { %567 = vmatprep.subr.bf16.mxu0 %v657_v0 }
  0x27   :  { %587 = vmatpush3.bf16.msra.mxu1 %v586_v43 }
  0x28   :  { %588 = vmatprep.subr.bf16.mxu1 %v657_v0 }
  0x29   :  { %569 = vmatpush3.bf16.msra.mxu0 %v568_v25 }
  0x2a   :  { %570 = vmatprep.subr.bf16.mxu0 %v657_v0 }
  0x2b   :  { %590 = vmatpush3.bf16.msra.mxu1 %v589_v46 }
  0x2c   :  { %591 = vmatprep.subr.bf16.mxu1 %v657_v0 }
  0x2d   :  { %572 = vmatpush3.bf16.msra.mxu0 %v571_v28 }
  0x2e   :  { %573 = vmatprep.subr.bf16.mxu0 %v657_v0 }
  0x2f   :  { %593 = vmatpush3.bf16.msra.mxu1 %v592_v49 }
  0x30   :  { %594 = vmatprep.subr.bf16.mxu1 %v657_v0 }
  0x31   :  { %575 = vmatpush3.bf16.msra.mxu0 %v574_v31 }
  0x32   :  { %576 = vmatprep.subr.bf16.mxu0 %v657_v0 }
  0x33   :  { %596 = vmatpush3.bf16.msra.mxu1 %v595_v52 }
  0x34   :  { %597 = vmatprep.subr.bf16.mxu1 %v657_v0 }
  0x35   :  { %578 = vmatpush3.bf16.msra.mxu0 %v577_v34 }
  0x37   :  { %599 = vmatpush3.bf16.msra.mxu1 %v598_v55 }
  0x38   :  { %600 = vmatprep.subr.bf16.mxu1 %v657_v0  ;;  %v322_v0 = vld [vmem:[%s889_s7 + $0x78] sm:$0xff]  ;;  %s630_s7 = scalar_lea.vmem %s408_s25, 128 }
  0x39   :  { %v601_v2 = vpack.c.bf16 %v322_v0, %v321_v1  ;;  %p631_p8 = scmp.ne.s32.totalorder %s408_s25, %s630_s7  ;;  %p636_p10 = scmp.lt.s32.totalorder %s630_s7, %s630_s7 }
  0x3b   :  { %602 = vmatpush3.bf16.msra.mxu1 %v601_v2  ;;  %p637_p11 = por %p636_p10, %p635_p9 }
  0x3d   :  { %p638_p12 = pnand %p637_p11, %p631_p8 }
  0xe9   :  { %v126_v56 = vpop.f32.mrb[0].mxu0 }
  0xea   :  { %v467_v57 = vpop.f32.mrb[1].mxu0 }
  0xf0   :  { %v200_v58 = vpop.f32.mrb[0].mxu1 }
  0xf1   :  { %v201_v60 = vadd.f32 %v200_v58, %v126_v56  ;;  %v478_v61 = vpop.f32.mrb[1].mxu1 }
  0xf3   :  { %v211_v62 = vadd.f32 %v419_v59, %v201_v60 }
  0xf5   :  { %v212_v63 = vmax.f32 %v211_v62, 0.0 }
  0xf7   :  { %512 = vmatmul.mubr.f32.vlgmr.msra.gmra.mrb[2].mxu0 %v212_v63 }
 0x1ca   :  { %v302_v4 = vpop.f32.mrb[2].mxu0 }
 0x1cb   :  { %v303_v5 = vadd.f32 %v420_v3, %v302_v4  ;;  %v513_v6 = vpop.f32.mrb[3].mxu0 }
 0x1cd   :  { %v306_v7 = vmax.f32 %v303_v5, 0.0 }
 0x1cf   :  { %547 = vmatmul.mubr.f32.vlgmr.msra.gmra.mrb[2].mxu1 %v306_v7 }
 0x2a2   :  { %v396_v9 = vpop.f32.mrb[2].mxu1 }
 0x2a3   :  { %v397_v10 = vadd.f32 %v421_v8, %v396_v9  ;;  %v548_v11 = vpop.f32.mrb[3].mxu1 }
 0x2a5   :  { %400 = vst.msk [vmem:[#allocation5] sm:$0xff] %vm130_vm3, %v397_v10 }
 0x2a6   :  { %641 = shalt.err (!%p638_p12)
}
 0x2a7   :  { %s642_s27 = scalar_lea.hbm %s891_s9, 128 }
 0x2a8   :  { %p643_p13 = scmp.ne.s32.totalorder %s891_s9, %s642_s27  ;;  %p646_p0 = scmp.lt.u32.totalorder %s642_s27, %s891_s9 }
 0x2aa   :  { %p648_p1 = pnand %p646_p0, %p643_p13 }
 0x2ac   :  { %651 = shalt.err (!%p648_p1)
}
 0x2ad   :  { %410 = dma.vmem_to_hbm [thread:$0]  %s408_s25, 128, %s891_s9, [#allocation4]  }
 0x2ae   :  { %654 = dma.done.wait [#allocation4], 128  }
 0x2af   :  { %655 = vsyncadd [#allocation4], 4294967168 }
 0x2b0   :  { %414 = vsyncpa [#allocation3], 1 }
 0x2b1   :  { %415 = vsyncpa [#allocation4], 1 }

</bundles_post_ra>
